<compile_context>
chip_gen: v7x
topology: tpu7x:2x2x1
jax: 0.10.0
libtpu: 0.0.40
codegen_flags: <defaults>
</compile_context>

<pallas_src>
import jax
import jax.numpy as jnp
from jax import lax
from jax.experimental import pallas as pl
from jax.experimental.pallas import tpu as pltpu

LANE = 128          # batch sits on the lane axis inside the kernel
TILE_B_MAX = 32768  # rows per grid step (~3 MiB feature-major input tile)
SPLIT_THRESH = 8192 # above this many rows, force >=2 grid steps (v7x megacore)


def _round_up(n, m):
    return ((n + m - 1) // m) * m


def _choose_tiling(B):
    """Pick (tile_b, B_pad): 128-aligned tiles, balanced grid, >=2 steps for
    large B so both v7x TensorCores get work, minimal tail padding."""
    B_lanes = _round_up(max(B, 1), LANE)
    n_steps = pl.cdiv(B_lanes, TILE_B_MAX)
    if n_steps == 1 and B_lanes >= 2 * SPLIT_THRESH:
        n_steps = 2
    tile_b = _round_up(pl.cdiv(B_lanes, n_steps), LANE)
    B_pad = tile_b * pl.cdiv(B_lanes, tile_b)
    return tile_b, B_pad


def _mlp_kernel(x_ref, w1_ref, b1_ref, w2_ref, b2_ref, w3_ref, b3_ref, o_ref):
    # x tile is already feature-major: (20, TILE_B), batch on the lane axis.
    xt = x_ref[...]
    h1 = jnp.tanh(
        jnp.dot(w1_ref[...], xt, preferred_element_type=jnp.float32)
        + b1_ref[...]                                            # (16, TILE_B)
    )
    h2 = jnp.tanh(
        jnp.dot(w2_ref[...], h1, preferred_element_type=jnp.float32)
        + b2_ref[...]                                            # (8, TILE_B)
    )
    o_ref[...] = (
        jnp.dot(w3_ref[...], h2, preferred_element_type=jnp.float32)
        + b3_ref[...]                                            # (2, TILE_B)
    )


def mlp_forward(x, params):
    """Runs the 3-layer MLP in a tiled Pallas kernel.

    x: (B, 20) float32
    params: w1 (16,20), b1 (16,1), w2 (8,16), b2 (8,1), w3 (2,8), b3 (2,1)
            (PyTorch (out_features, in_features) weight layout, column biases)
    returns: (2, B) float32 logits, lane-dense (row 0 = real, row 1 = imag).
    """
    x = x.astype(jnp.float32)
    B, in_f = x.shape

    tile_b, B_pad = _choose_tiling(B)
    grid = (B_pad // tile_b,)

    # Feature-major once in the wrapper; padded batch columns are zeros.
    xT = x.T                                                    # (in_f, B)
    if B_pad != B:
        xT = jnp.pad(xT, ((0, 0), (0, B_pad - B)))

    w1, b1 = params["w1"], params["b1"]
    w2, b2 = params["w2"], params["b2"]
    w3, b3 = params["w3"], params["b3"]

    weight_bytes = sum(int(a.size) * 4 for a in (w1, b1, w2, b2, w3, b3))
    cost = pl.CostEstimate(
        flops=2 * B_pad * (20 * 16 + 16 * 8 + 8 * 2),
        transcendentals=24 * B_pad,
        bytes_accessed=B_pad * (in_f * 4 + 2 * 4) + weight_bytes,
    )

    # Weights/biases: full-array blocks, constant index_map -> VMEM-resident.
    def _pinned(a):
        return pl.BlockSpec(a.shape, lambda i: (0, 0))

    logits_t = pl.pallas_call(
        _mlp_kernel,
        out_shape=jax.ShapeDtypeStruct((2, B_pad), jnp.float32),
        grid=grid,
        in_specs=[
            pl.BlockSpec((in_f, tile_b), lambda i: (0, i)),   # x tile (20, tile_b)
            _pinned(w1), _pinned(b1),
            _pinned(w2), _pinned(b2),
            _pinned(w3), _pinned(b3),
        ],
        out_specs=pl.BlockSpec((2, tile_b), lambda i: (0, i)),  # lane-dense out
        compiler_params=pltpu.CompilerParams(
            dimension_semantics=("parallel",),
        ),
        cost_estimate=cost,
    )(xT, w1, b1, w2, b2, w3, b3)

    return logits_t[:, :B]


def neural_network_forward(x, params):
    """Full forward matching the PyTorch numpy-input branch:
    logits -> complex64 out = logits[:, 0] + 1j * logits[:, 1]."""
    logits_t = mlp_forward(x, params)                 # (2, B), lane-dense rows
    return lax.complex(logits_t[0], logits_t[1]).astype(jnp.complex64)


def init_params(key):
    """Deterministic init mimicking torch.nn.Linear defaults:
    U(-1/sqrt(fan_in), 1/sqrt(fan_in)). Weights stored in PyTorch layout
    (out_features, in_features); biases as (out_features, 1) columns."""
    dims = [(20, 16), (16, 8), (8, 2)]
    params = {}
    keys = jax.random.split(key, 2 * len(dims))
    for i, (fan_in, fan_out) in enumerate(dims):
        bound = 1.0 / jnp.sqrt(jnp.float32(fan_in))
        w = jax.random.uniform(
            keys[2 * i], (fan_out, fan_in), jnp.float32, -bound, bound
        )
        b = jax.random.uniform(
            keys[2 * i + 1], (fan_out, 1), jnp.float32, -bound, bound
        )
        params[f"w{i + 1}"] = w
        params[f"b{i + 1}"] = b
    return params


if __name__ == "__main__":
    key = jax.random.PRNGKey(0)
    pkey, xkey = jax.random.split(key)
    params = init_params(pkey)

    batch = 8
    x = jax.random.normal(xkey, (batch, 20), dtype=jnp.float32)

    # Run the Pallas kernel path.
    out = neural_network_forward(x, params)
    out = jax.block_until_ready(out)

    # Pure-JAX reference of the same math (PyTorch convention: x @ W.T + b).
    h1 = jnp.tanh(x @ params["w1"].T + params["b1"].T)
    h2 = jnp.tanh(h1 @ params["w2"].T + params["b2"].T)
    logits_ref = h2 @ params["w3"].T + params["b3"].T
    ref = (logits_ref[:, 0] + 1j * logits_ref[:, 1]).astype(jnp.complex64)

    assert out.shape == (batch,)
    assert out.dtype == jnp.complex64
    assert jnp.allclose(out, ref, atol=1e-5, rtol=1e-5)

    print("KERNEL_OK")
</pallas_src>

<mosaic_0001>
module attributes {stable_mosaic.version = 11 : i64} {
  func.func @_mlp_kernel(%arg0: i32, %arg1: memref<20x128xf32, #tpu.memory_space<vmem>>, %arg2: memref<16x20xf32, #tpu.memory_space<vmem>>, %arg3: memref<16x1xf32, #tpu.memory_space<vmem>>, %arg4: memref<8x16xf32, #tpu.memory_space<vmem>>, %arg5: memref<8x1xf32, #tpu.memory_space<vmem>>, %arg6: memref<2x8xf32, #tpu.memory_space<vmem>>, %arg7: memref<2x1xf32, #tpu.memory_space<vmem>>, %arg8: memref<2x128xf32, #tpu.memory_space<vmem>>) attributes {dimension_semantics = [#tpu.dimension_semantics<parallel>], iteration_bounds = array<i64: 1>, scalar_prefetch = 0 : i64, scratch_operands = 0 : i64, tpu.core_type = #tpu.core_type<tc>, window_params = [{transform_indices = @transform_0, window_bounds = array<i64: 20, 128>}, {pipeline_mode = #tpu.pipeline_mode<synchronous>, transform_indices = @transform_1, window_bounds = array<i64: 16, 20>}, {pipeline_mode = #tpu.pipeline_mode<synchronous>, transform_indices = @transform_2, window_bounds = array<i64: 16, 1>}, {pipeline_mode = #tpu.pipeline_mode<synchronous>, transform_indices = @transform_3, window_bounds = array<i64: 8, 16>}, {pipeline_mode = #tpu.pipeline_mode<synchronous>, transform_indices = @transform_4, window_bounds = array<i64: 8, 1>}, {pipeline_mode = #tpu.pipeline_mode<synchronous>, transform_indices = @transform_5, window_bounds = array<i64: 2, 8>}, {pipeline_mode = #tpu.pipeline_mode<synchronous>, transform_indices = @transform_6, window_bounds = array<i64: 2, 1>}, {transform_indices = @transform_7, window_bounds = array<i64: 2, 128>}]} {
    %c0 = arith.constant 0 : index
    %c0_0 = arith.constant 0 : index
    %0 = vector.load %arg1[%c0, %c0_0] : memref<20x128xf32, #tpu.memory_space<vmem>>, vector<20x128xf32>
    %c0_1 = arith.constant 0 : index
    %c0_2 = arith.constant 0 : index
    %1 = vector.load %arg2[%c0_1, %c0_2] : memref<16x20xf32, #tpu.memory_space<vmem>>, vector<16x20xf32>
    %cst = arith.constant dense<0.000000e+00> : vector<16x128xf32>
    %2 = tpu.matmul %1, %0, %cst {dimension_numbers = #tpu.dot_dimension_numbers<[1], [0], [0], [1], [0, 0, 1, 1], [], []>} : vector<16x20xf32>, vector<20x128xf32>, vector<16x128xf32> -> vector<16x128xf32>
    %c0_3 = arith.constant 0 : index
    %c0_4 = arith.constant 0 : index
    %3 = vector.load %arg3[%c0_3, %c0_4] : memref<16x1xf32, #tpu.memory_space<vmem>>, vector<16x1xf32>
    %4 = vector.broadcast %3 : vector<16x1xf32> to vector<16x128xf32>
    %5 = arith.addf %2, %4 : vector<16x128xf32>
    %6 = math.tanh %5 : vector<16x128xf32>
    %c0_5 = arith.constant 0 : index
    %c0_6 = arith.constant 0 : index
    %7 = vector.load %arg4[%c0_5, %c0_6] : memref<8x16xf32, #tpu.memory_space<vmem>>, vector<8x16xf32>
    %cst_7 = arith.constant dense<0.000000e+00> : vector<8x128xf32>
    %8 = tpu.matmul %7, %6, %cst_7 {dimension_numbers = #tpu.dot_dimension_numbers<[1], [0], [0], [1], [0, 0, 1, 1], [], []>} : vector<8x16xf32>, vector<16x128xf32>, vector<8x128xf32> -> vector<8x128xf32>
    %c0_8 = arith.constant 0 : index
    %c0_9 = arith.constant 0 : index
    %9 = vector.load %arg5[%c0_8, %c0_9] : memref<8x1xf32, #tpu.memory_space<vmem>>, vector<8x1xf32>
    %10 = vector.broadcast %9 : vector<8x1xf32> to vector<8x128xf32>
    %11 = arith.addf %8, %10 : vector<8x128xf32>
    %12 = math.tanh %11 : vector<8x128xf32>
    %c0_10 = arith.constant 0 : index
    %c0_11 = arith.constant 0 : index
    %13 = vector.load %arg6[%c0_10, %c0_11] : memref<2x8xf32, #tpu.memory_space<vmem>>, vector<2x8xf32>
    %cst_12 = arith.constant dense<0.000000e+00> : vector<2x128xf32>
    %14 = tpu.matmul %13, %12, %cst_12 {dimension_numbers = #tpu.dot_dimension_numbers<[1], [0], [0], [1], [0, 0, 1, 1], [], []>} : vector<2x8xf32>, vector<8x128xf32>, vector<2x128xf32> -> vector<2x128xf32>
    %c0_13 = arith.constant 0 : index
    %c0_14 = arith.constant 0 : index
    %15 = vector.load %arg7[%c0_13, %c0_14] : memref<2x1xf32, #tpu.memory_space<vmem>>, vector<2x1xf32>
    %16 = vector.broadcast %15 : vector<2x1xf32> to vector<2x128xf32>
    %17 = arith.addf %14, %16 : vector<2x128xf32>
    %c0_15 = arith.constant 0 : index
    %c0_16 = arith.constant 0 : index
    %18 = vector.load %arg8[%c0_15, %c0_16] : memref<2x128xf32, #tpu.memory_space<vmem>>, vector<2x128xf32>
    tpu.vector_store %arg8[%c0_15, %c0_16], %17 {strides = array<i32>} : memref<2x128xf32, #tpu.memory_space<vmem>>, vector<2x128xf32>,
    return
  }
  func.func @transform_0(%arg0: i32) -> (i32, i32) {
    %c0_i32 = arith.constant 0 : i32
    %c0_i32_0 = arith.constant 0 : i32
    return %c0_i32, %arg0 : i32, i32
  }
  func.func @transform_1(%arg0: i32) -> (i32, i32) {
    %c0_i32 = arith.constant 0 : i32
    %c0_i32_0 = arith.constant 0 : i32
    %c0_i32_1 = arith.constant 0 : i32
    return %c0_i32, %c0_i32_0 : i32, i32
  }
  func.func @transform_2(%arg0: i32) -> (i32, i32) {
    %c0_i32 = arith.constant 0 : i32
    %c0_i32_0 = arith.constant 0 : i32
    %c0_i32_1 = arith.constant 0 : i32
    return %c0_i32, %c0_i32_0 : i32, i32
  }
  func.func @transform_3(%arg0: i32) -> (i32, i32) {
    %c0_i32 = arith.constant 0 : i32
    %c0_i32_0 = arith.constant 0 : i32
    %c0_i32_1 = arith.constant 0 : i32
    return %c0_i32, %c0_i32_0 : i32, i32
  }
  func.func @transform_4(%arg0: i32) -> (i32, i32) {
    %c0_i32 = arith.constant 0 : i32
    %c0_i32_0 = arith.constant 0 : i32
    %c0_i32_1 = arith.constant 0 : i32
    return %c0_i32, %c0_i32_0 : i32, i32
  }
  func.func @transform_5(%arg0: i32) -> (i32, i32) {
    %c0_i32 = arith.constant 0 : i32
    %c0_i32_0 = arith.constant 0 : i32
    %c0_i32_1 = arith.constant 0 : i32
    return %c0_i32, %c0_i32_0 : i32, i32
  }
  func.func @transform_6(%arg0: i32) -> (i32, i32) {
    %c0_i32 = arith.constant 0 : i32
    %c0_i32_0 = arith.constant 0 : i32
    %c0_i32_1 = arith.constant 0 : i32
    return %c0_i32, %c0_i32_0 : i32, i32
  }
  func.func @transform_7(%arg0: i32) -> (i32, i32) {
    %c0_i32 = arith.constant 0 : i32
    %c0_i32_0 = arith.constant 0 : i32
    return %c0_i32, %arg0 : i32, i32
  }
}

</mosaic_0001>

<bundles_post_ra>
// kernel: tpu_custom_call.1
= control target key start
LH: loop header
LB: loop body
LE: loop exit
PB: predicated region body
PF: predicated region fallthrough
CT: control target
= control target key end

     0   :  { %12 = vsyncpa [#allocation3], 0  ;;  %s535_s0 = inlined_call_operand.vmem [shape: f32[20,128], index: 0, kind: input, shape index: {}]   ;;  %s536_s1 = inlined_call_operand.hbm [shape: f32[16,20], index: 1, kind: input, shape index: {}]   ;;  %s537_s2 = inlined_call_operand.vmem [shape: f32[16,1], index: 2, kind: input, shape index: {}]   ;;  %s538_s3 = inlined_call_operand.vmem [shape: f32[8,16], index: 3, kind: input, shape index: {}]   ;;  %s539_s4 = inlined_call_operand.vmem [shape: f32[8,1], index: 4, kind: input, shape index: {}]   ;;  %s540_s5 = inlined_call_operand.vmem [shape: f32[2,8], index: 5, kind: input, shape index: {}]   ;;  %s541_s6 = inlined_call_operand.vmem [shape: f32[2,1], index: 6, kind: input, shape index: {}]   ;;  %s542_s7 = inlined_call_operand.hbm [shape: f32[2,128], index: 7, kind: output, shape index: {}]  }
   0x1   :  { %13 = vsyncpa [#allocation4], 0  ;;  %s432_s24 = smov [#allocation2]   ;;  %s384_s28 = scalar_lea.hbm %s536_s1, 256 }
   0x2   :  { %s21_s25 = sshll.u32 %s432_s24, 4  ;;  %p385_p0 = scmp.ne.s32.totalorder %s536_s1, %s384_s28  ;;  %s22_s25 = int_to_ptr.vmem [resolvable:$true] %s21_s25 }
   0x3   :  { %p388_p1 = scmp.lt.u32.totalorder %s384_s28, %s536_s1 }
   0x5   :  { %p390_p2 = pnand %p388_p1, %p385_p0 }
   0x7   :  { %393 = shalt.err (!%p390_p2)
}
   0x8   :  { %s394_s10 = scalar_lea.vmem %s22_s25, 256  ;;  %p399_p4 = scmp.lt.s32.totalorder %s22_s25, %s22_s25 }
   0x9   :  { %p395_p3 = scmp.ne.s32.totalorder %s22_s25, %s394_s10  ;;  %p400_p5 = scmp.lt.s32.totalorder %s394_s10, %s394_s10 }
   0xb   :  { %p401_p6 = por %p400_p5, %p399_p4 }
   0xd   :  { %p402_p7 = pnand %p401_p6, %p395_p3 }
   0xf   :  { %405 = shalt.err (!%p402_p7)
}
  0x10   :  { %s433_s11 = smov 128   ;;  %s434_s12 = smov 8  }
  0x11   :  { %27 = dma.hbm_to_vmem [thread:$0]  %s536_s1, 256, %s22_s25, [#allocation3], %s433_s11, %s433_s11, %s434_s12  }
  0x12   :  { %428 = dma.done.wait [#allocation3], 256  }
  0x13   :  { %429 = vsyncadd [#allocation3], 4294967040  ;;  %v435_v0 = vmov 0   ;;  %vm58_vm0 = vcmask 162816   ;;  %v41_v1 = vld [vmem:[%s535_s0] sm:$0xff]  ;;  %v42_v2 = vld [vmem:[%s535_s0 + $0x8] sm:$0xff] }
  0x14   :  { %376 = vset.pattern.permute.xlu0 %v435_v0  ;;  %377 = vset.pattern.permute.xlu1 %v435_v0  ;;  %v361_v3 = vpack.c.bf16 %v42_v2, %v41_v1  ;;  %v44_v4 = vld [vmem:[#allocation2] sm:$0xff]  ;;  %v43_v6 = vld [vmem:[%s535_s0 + $0x10] sm:$0xf]  ;;  %vm65_vm1 = vcmask 1043456   ;;  %v47_v7 = vld [vmem:[%s537_s2 + $0x8] sm:$0xff]  ;;  %v436_v9 = vmov 0.0|0.0  }
  0x15   :  { %v46_v5 = vld [vmem:[%s537_s2] sm:$0xff]  ;;  %346 = vmatprep.mubr.msk.f32.mxu0 %vm58_vm0, %v44_v4  ;;  %v45_v8 = vld [vmem:[#allocation2 + $0x8] sm:$0xff]  ;;  %365 = vmatprep.subr.bf16.mxu1 %v436_v9  ;;  %vm437_vm2 = vmmov 0   ;;  %v438_v10 = vmov 0.0   ;;  %vm153_vm3 = vcmask 130048   ;;  %vm235_vm4 = vcmask 64512  }
  0x16   :  { %50 = vperm.xlu0 %376, %v46_v5   ;;  %362 = vmatprep.subr.bf16.mxu0 %v361_v3  ;;  %v147_v11 = vld [vmem:[%s539_s4] sm:$0xff]  ;;  %s439_s28 = smov [#allocation5]  }
  0x17   :  { %364 = vmatpush3.bf16.msra.mxu0 %v361_v3  ;;  %353 = vmatprep.mubr.msk.f32.mxu1 %vm437_vm2, %v438_v10  ;;  %v229_v12 = vld [vmem:[%s541_s6] sm:$0x3] }
  0x18   :  { %344 = vmatprep.subr.msk.mxu0 %vm65_vm1, %v43_v6  ;;  %150 = vperm.xlu1 %377, %v147_v11   ;;  %v146_v22 = vld [vmem:[%s538_s3] sm:$0xff]  ;;  %s316_s3 = sshll.u32 %s439_s28, 4  ;;  %s317_s3 = int_to_ptr.vmem [resolvable:$true] %s316_s3 }
  0x19   :  { %v228_v27 = vld [vmem:[%s540_s5] sm:$0x3]  ;;  %s406_s29 = scalar_lea.vmem %s317_s3, 32  ;;  %p411_p9 = scmp.lt.s32.totalorder %s317_s3, %s317_s3 }
  0x1a   :  { %55 = vperm.xlu0 %376, %v47_v7   ;;  %p407_p8 = scmp.ne.s32.totalorder %s317_s3, %s406_s29  ;;  %p412_p10 = scmp.lt.s32.totalorder %s406_s29, %s406_s29 }
  0x1b   :  { %345 = vmatpush3.msk.msra.mxu0 %vm65_vm1, %v43_v6 }
  0x1c   :  { %347 = vmatmul.mubr.msk.f32.vlgmr.msra.gmra.mrb[0].mxu0 %vm58_vm0, %v45_v8  ;;  %232 = vperm.xlu1 %377, %v229_v12   ;;  %p413_p11 = por %p412_p10, %p411_p9 }
  0x1e   :  { %p414_p12 = pnand %p413_p11, %p407_p8 }
  0x95   :  { %v51_v13 = vpop.permute.xlu0 %50 }
  0x97   :  { %v151_v23 = vpop.permute.xlu1 %150 }
  0x99   :  { %v56_v14 = vpop.permute.xlu0 %55 }
  0x9b   :  { %v233_v29 = vpop.permute.xlu1 %232 }
  0xef   :  { %v348_v15 = vpop.f32.mrb[0].mxu0 }
  0xf0   :  { %v141_v16 = vadd.f32 %v348_v15, %v56_v14  ;;  %v135_v17 = vpop.f32.mrb[1].mxu0 }
  0xf1   :  { %v136_v18 = vadd.f32 %v135_v17, %v51_v13 }
  0xf2   :  { %378 = vtanh.f32 %v141_v16 }
  0xf3   :  { %380 = vtanh.f32 %v136_v18 }
  0xfc   :  { %v379_v19 = vpop.eup %378 }
  0xfd   :  { %v381_v20 = vpop.eup %380 }
  0xfe   :  { %v366_v21 = vpack.c.bf16 %v379_v19, %v381_v20 }
 0x100   :  { %367 = vmatpush3.bf16.msra.mxu1 %v366_v21 }
 0x101   :  { %356 = vmatprep.subr.mxu1 %v438_v10 }
 0x103   :  { %354 = vmatmul.mubr.msk.f32.vlgmr.msra.gmra.mrb[0].mxu1 %vm153_vm3, %v146_v22 }
 0x104   :  { %358 = vmatprep.mubr.msk.f32.mxu1 %vm437_vm2, %v438_v10 }
 0x1d6   :  { %v223_v24 = vpop.f32.mrb[0].mxu1 }
 0x1d7   :  { %v224_v25 = vadd.f32 %v223_v24, %v151_v23  ;;  %v355_v26 = vpop.f32.mrb[1].mxu1 }
 0x1d9   :  { %382 = vtanh.f32 %v224_v25 }
 0x1e3   :  { %v383_v28 = vpop.eup %382 }
 0x1e4   :  { %357 = vmatpush3.msra.mxu1 %v383_v28 }
 0x1e5   :  { %359 = vmatmul.mubr.msk.f32.vlgmr.msra.gmra.mrb[2].mxu1 %vm235_vm4, %v228_v27 }
 0x2b8   :  { %v305_v30 = vpop.f32.mrb[2].mxu1 }
 0x2b9   :  { %v306_v31 = vadd.f32 %v305_v30, %v233_v29  ;;  %v360_v32 = vpop.f32.mrb[3].mxu1 }
 0x2bb   :  { %309 = vst [vmem:[#allocation5] sm:$0x3] %v306_v31 }
 0x2bc   :  { %417 = shalt.err (!%p414_p12)
}
 0x2bd   :  { %s418_s8 = scalar_lea.hbm %s542_s7, 32 }
 0x2be   :  { %p419_p13 = scmp.ne.s32.totalorder %s542_s7, %s418_s8  ;;  %p422_p0 = scmp.lt.u32.totalorder %s418_s8, %s542_s7 }
 0x2c0   :  { %p424_p1 = pnand %p422_p0, %p419_p13 }
 0x2c2   :  { %427 = shalt.err (!%p424_p1)
}
 0x2c3   :  { %319 = dma.vmem_to_hbm [thread:$0]  %s317_s3, 32, %s542_s7, [#allocation4]  }
 0x2c4   :  { %430 = dma.done.wait [#allocation4], 32  }
 0x2c5   :  { %431 = vsyncadd [#allocation4], 4294967264 }
 0x2c6   :  { %323 = vsyncpa [#allocation3], 1 }
 0x2c7   :  { %324 = vsyncpa [#allocation4], 1 }

</bundles_post_ra>
